<compile_context>
chip_gen: v5e
topology: v5e:2x2
jax: 0.10.0
libtpu: 0.0.40
codegen_flags: <defaults>
</compile_context>

<pallas_src>
import jax
import jax.numpy as jnp
from jax.experimental import pallas as pl
from jax.experimental.pallas import tpu as pltpu


def _round_up(x, m):
    return ((x + m - 1) // m) * m


def _cdiv(a, b):
    return (a + b - 1) // b


# ----------------------------- kernel ------------------------------------ #

def _one_hot_kernel(y_ref, o_ref):
    # y_ref: (TB, 1) int32 labels; o_ref: (TB, TC) one-hot block.
    # Lane-dense compare-against-iota, offset by the class-grid position.
    # Out-of-range / negative labels (used for batch padding) produce all-zero
    # rows, matching jax.nn.one_hot semantics.
    tc = o_ref.shape[-1]
    class_off = pl.program_id(1) * tc
    y = y_ref[...]                                                    # (TB, 1)
    classes = jax.lax.broadcasted_iota(jnp.int32, o_ref.shape, 1) + class_off
    o_ref[...] = (y == classes).astype(o_ref.dtype)


# ----------------------------- wrapper ------------------------------------ #

_TARGET_BLOCK_BYTES = 1 << 20    # ~1 MiB per output block (~2 MiB double-buffered)
_MAX_TB = 2048                   # row cap per block
_PALLAS_MIN_BYTES = 256 << 10    # below this, XLA's fused one_hot wins


def one_hot(y, n_classes, out_dtype=jnp.float32, *, use_pallas=None):
    """y: (B,) integer labels -> (B, n_classes) one-hot in out_dtype."""
    B = int(y.shape[0])
    n_classes = int(n_classes)
    dsize = jnp.dtype(out_dtype).itemsize

    if use_pallas is None:
        # Tiny outputs: launch overhead + DMA setup dwarfs the work.
        use_pallas = B * n_classes * dsize >= _PALLAS_MIN_BYTES
    if not use_pallas or B == 0 or n_classes <= 0:
        return jax.nn.one_hot(y, n_classes, dtype=out_dtype)

    # Sublane granularity for the output dtype: 8 (f32), 16 (bf16), 32 (int8).
    sub = max(8, 32 // dsize)

    # ---- class-axis tiling ------------------------------------------------
    if n_classes * dsize * sub <= _TARGET_BLOCK_BYTES:
        # Common case: full class dim in a single block. No lane padding and
        # no post-kernel class slice; masked stores only affect the tail
        # <128-lane group, far cheaper than padding + an extra HBM pass.
        TC = n_classes
        C_total = n_classes
    else:
        # Huge class counts: tile the class axis in 128-lane multiples so the
        # double-buffered block stays small (safe in v7x's 64 MiB VMEM).
        TC = max(128, (_TARGET_BLOCK_BYTES // (128 * dsize)) // 128 * 128)
        C_total = _round_up(n_classes, TC)
    nC = C_total // TC

    # ---- batch-axis tiling (balanced, VMEM/byte-budget aware) -------------
    rows_budget = max(sub, (_TARGET_BLOCK_BYTES // (TC * dsize)) // sub * sub)
    TB_max = min(_MAX_TB, rows_budget)
    nB = _cdiv(B, TB_max)
    TB = min(TB_max, _round_up(_cdiv(B, nB), sub))   # balanced tile, < 1 tile slack
    B_pad = nB * TB

    # Labels as a (B_pad, 1) int32 VMEM column; pad rows with -1 (=> zero rows,
    # sliced off below only if padding was actually needed).
    y2d = y.astype(jnp.int32).reshape(B, 1)
    if B_pad != B:
        y2d = jnp.pad(y2d, ((0, B_pad - B), (0, 0)), constant_values=-1)

    # Explicit VMEM budget: double-buffered output block + lane-padded label
    # block + slack, clamped under the 32 MiB scoped default (v7x-safe).
    vmem_bytes = 2 * (TB * TC * dsize + TB * 512) + (1 << 20)
    vmem_bytes = int(min(max(vmem_bytes, 2 << 20), 32 << 20))

    out = pl.pallas_call(
        _one_hot_kernel,
        out_shape=jax.ShapeDtypeStruct((B_pad, C_total), out_dtype),
        grid=(nB, nC),
        # Label block index only depends on the batch grid position -> it is
        # not re-fetched across class-grid steps.
        in_specs=[pl.BlockSpec((TB, 1), lambda i, j: (i, 0))],
        out_specs=pl.BlockSpec((TB, TC), lambda i, j: (i, j)),
        compiler_params=pltpu.CompilerParams(
            dimension_semantics=("parallel", "parallel"),
            vmem_limit_bytes=vmem_bytes,
        ),
    )(y2d)

    # Slice only when padding was actually introduced (common path: no slice).
    if B_pad != B or C_total != n_classes:
        out = out[:B, :n_classes]
    return out


class Terminal:
    """Pallas/JAX re-implementation of the PyTorch Terminal module."""

    def __init__(self, n_classes=10, key=None):
        self.n_classes = n_classes
        if key is None:
            key = jax.random.PRNGKey(0)
        k_id, k_val = jax.random.split(key)
        # torch.randint(0, 3, (1,)) -> integer in {0, 1, 2}, fixed at init.
        self.id = int(jax.random.randint(k_id, (1,), 0, 3)[0])
        # torch.rand(1) -> uniform [0, 1) scalar parameter.
        self.value = jax.random.uniform(k_val, (1,), dtype=jnp.float32)
        # TODO(synk): requires_grad_ semantics (grad tracking) are handled by
        # JAX transformations externally, not inside the kernel.

    def __str__(self):
        if self.id == 0:
            return 'preds'
        elif self.id == 1:
            return 'y'
        elif self.id == 2:
            return str(round(float(self.value[0]), 4))

    def forward(self, preds, y):
        if self.id == 0:
            # Pure identity: returning the input directly matches PyTorch and
            # avoids a zero-compute HBM round trip.
            return preds
        elif self.id == 1:
            return one_hot(y, self.n_classes)
        elif self.id == 2:
            # Scalar parameter passthrough: no kernel, no launch overhead.
            return self.value

    __call__ = forward


# ------------------------------- main ------------------------------------ #

if __name__ == "__main__":
    key = jax.random.PRNGKey(0)
    k_preds, k_y, k_mod, k_y2 = jax.random.split(key, 4)

    B, n_classes = 8, 10
    preds = jax.random.normal(k_preds, (B, n_classes), dtype=jnp.float32)
    y = jax.random.randint(k_y, (B,), 0, n_classes, dtype=jnp.int32)

    term = Terminal(n_classes=n_classes, key=k_mod)

    out = term(preds, y)
    out = jax.block_until_ready(out)

    # Sanity check the randomly selected branch.
    if term.id == 0:
        ref = preds
    elif term.id == 1:
        ref = jax.nn.one_hot(y, n_classes, dtype=jnp.float32)
    else:
        ref = term.value
    assert out.shape == ref.shape, (out.shape, ref.shape)
    assert jnp.allclose(out, ref), "mismatch vs reference"

    # Exercise all three branches explicitly.
    for forced_id in range(3):
        term.id = forced_id
        o = jax.block_until_ready(term(preds, y))
        if forced_id == 0:
            assert o.shape == preds.shape
            assert jnp.allclose(o, preds)
        elif forced_id == 1:
            ref1 = jax.nn.one_hot(y, n_classes, dtype=jnp.float32)
            assert o.shape == ref1.shape
            assert jnp.allclose(o, ref1)
        else:
            assert jnp.allclose(o, term.value)

    # --- Exercise the Pallas kernel path explicitly ------------------------
    # Small, single-block case (full class dim, no padding, no slice).
    oh_small = jax.block_until_ready(one_hot(y, n_classes, use_pallas=True))
    ref_small = jax.nn.one_hot(y, n_classes, dtype=jnp.float32)
    assert oh_small.shape == ref_small.shape
    assert jnp.allclose(oh_small, ref_small), "one_hot mismatch (small pallas path)"

    # Batch that needs row padding + balanced tiling.
    B2 = 1037
    y_big = jax.random.randint(k_y2, (B2,), 0, n_classes, dtype=jnp.int32)
    oh_big = jax.block_until_ready(one_hot(y_big, n_classes, use_pallas=True))
    ref_big = jax.nn.one_hot(y_big, n_classes, dtype=jnp.float32)
    assert oh_big.shape == ref_big.shape
    assert jnp.allclose(oh_big, ref_big), "one_hot mismatch on padded/tiled batch"

    # bf16 output path (halves HBM store traffic; sublane granularity 16).
    oh_bf16 = jax.block_until_ready(one_hot(y, n_classes, jnp.bfloat16, use_pallas=True))
    ref_bf16 = jax.nn.one_hot(y, n_classes, dtype=jnp.bfloat16)
    assert oh_bf16.shape == ref_bf16.shape
    assert jnp.allclose(oh_bf16.astype(jnp.float32), ref_bf16.astype(jnp.float32)), \
        "one_hot mismatch (bf16 pallas path)"

    print("KERNEL_OK")
</pallas_src>

<mosaic_0001>
module attributes {stable_mosaic.version = 11 : i64} {
  func.func @_one_hot_kernel(%arg0: i32, %arg1: i32, %arg2: memref<8x1xi32, #tpu.memory_space<vmem>>, %arg3: memref<8x10xf32, #tpu.memory_space<vmem>>) attributes {dimension_semantics = [#tpu.dimension_semantics<parallel>, #tpu.dimension_semantics<parallel>], iteration_bounds = array<i64: 1, 1>, scalar_prefetch = 0 : i64, scratch_operands = 0 : i64, tpu.core_type = #tpu.core_type<tc>, window_params = [{transform_indices = @transform_0, window_bounds = array<i64: 8, 1>}, {transform_indices = @transform_1, window_bounds = array<i64: 8, 10>}]} {
    %c10_i32 = arith.constant 10 : i32
    %0 = arith.muli %arg1, %c10_i32 : i32
    %c0 = arith.constant 0 : index
    %c0_0 = arith.constant 0 : index
    %1 = vector.load %arg2[%c0, %c0_0] : memref<8x1xi32, #tpu.memory_space<vmem>>, vector<8x1xi32>
    %2 = tpu.iota {dimensions = array<i32: 1>} : vector<8x10xi32>
    %3 = vector.broadcast %0 : i32 to vector<8x10xi32>
    %4 = arith.addi %2, %3 : vector<8x10xi32>
    %5 = vector.broadcast %1 : vector<8x1xi32> to vector<8x10xi32>
    %6 = arith.cmpi eq, %5, %4 : vector<8x10xi32>
    %7 = arith.extui %6 : vector<8x10xi1> to vector<8x10xi32>
    %8 = arith.sitofp %7 : vector<8x10xi32> to vector<8x10xf32>
    %c0_1 = arith.constant 0 : index
    %c0_2 = arith.constant 0 : index
    %9 = vector.load %arg3[%c0_1, %c0_2] : memref<8x10xf32, #tpu.memory_space<vmem>>, vector<8x10xf32>
    tpu.vector_store %arg3[%c0_1, %c0_2], %8 {strides = array<i32>} : memref<8x10xf32, #tpu.memory_space<vmem>>, vector<8x10xf32>,
    return
  }
  func.func @transform_0(%arg0: i32, %arg1: i32) -> (i32, i32) {
    %c0_i32 = arith.constant 0 : i32
    %c0_i32_0 = arith.constant 0 : i32
    return %arg0, %c0_i32 : i32, i32
  }
  func.func @transform_1(%arg0: i32, %arg1: i32) -> (i32, i32) {
    %c0_i32 = arith.constant 0 : i32
    return %arg0, %arg1 : i32, i32
  }
}

</mosaic_0001>

<bundles_post_ra>
// kernel: tpu_custom_call.1
= control target key start
LH: loop header
LB: loop body
LE: loop exit
PB: predicated region body
PF: predicated region fallthrough
CT: control target
= control target key end

     0   :  { %s89_s0 = inlined_call_operand.vmem [shape: s32[8,1], index: 0, kind: input, shape index: {}]   ;;  %s90_s1 = inlined_call_operand.hbm [shape: f32[8,10], index: 1, kind: output, shape index: {}]  }
   0x1   :  { %v10_v0 = vld [vmem:[%s89_s0] sm:$0xff] }
   0x2   :  { %6 = vsyncpa [#allocation3], 0  ;;  %v70_v1 = vmov 0   ;;  %v11_v2 = vlaneseq  ;;  %s71_s8 = smov [#allocation2]   ;;  %s30_s12 = sshll.u32 %s90_s1, 4  ;;  %vm21_vm0 = vcmask 80896   ;;  %s31_s12 = int_to_ptr.hbm [resolvable:$true] %s30_s12 }
   0x3   :  { %43 = vset.pattern.permute.xlu0 %v70_v1  ;;  %s28_s9 = sshll.u32 %s71_s8, 4  ;;  %v72_v5 = vmov 0.0   ;;  %s29_s9 = int_to_ptr.vmem [resolvable:$true] %s28_s9 }
   0x4   :  { %16 = vperm.xlu0 %43, %v10_v0   ;;  %v12_v3 = vand.u32 127, %v11_v2 }
  0x76   :  { %v17_v4 = vpop.permute.xlu0 %16 }
  0x77   :  { %vm18_vm1 = vcmp.eq.s32.totalorder %v17_v4, %v12_v3 }
  0x78   :  { %v39_v6 = vsel %vm18_vm1, 1.0, %v72_v5 }
  0x79   :  { %22 = vst.msk [vmem:[#allocation2] sm:$0xff] %vm21_vm0, %v39_v6 }
  0x7a   :  { %33 = dma.vmem_to_hbm [thread:$0]  %s29_s9, 128, %s31_s12, [#allocation3]  }
  0x7b   :  { %68 = dma.done.wait [#allocation3], 128  }
  0x7c   :  { %69 = vsyncadd [#allocation3], 4294967168 }
  0x7d   :  { %38 = vsyncpa [#allocation3], 1 }

</bundles_post_ra>
